<compile_context>
chip_gen: v5e
topology: v5e:2x2
jax: 0.10.0
libtpu: 0.0.40
codegen_flags: <defaults>
</compile_context>

<pallas_src>
import functools

import jax
import jax.numpy as jnp
from jax.experimental import pallas as pl
from jax.experimental.pallas import tpu as pltpu


HIDDEN = 64
LANES = 128            # output padded to a lane-dense 128-wide slab
NEG_BIG = -1e30        # bias for padded output lanes -> never wins argmax
_SUBLANE = 16          # batch tiles kept multiples of 16 (bf16 (16,128) tiling)
_MIN_SPLIT_ROWS = 512  # only force a >=2-step grid when each half has >=512 rows


def _round_up(n, m):
    return (n + m - 1) // m * m


def _ceil_div(a, b):
    return -(-a // b)


def dqn_mlp_kernel(x_ref, w1_ref, b1_ref, w2_ref, b2_ref, w3_ref, b3_ref, q_ref):
    """Fused forward + greedy argmax for one (TB, ...) batch tile."""
    x = x_ref[...]                        # (TB, S)  f32
    w1 = w1_ref[...]                      # (S, 64)  f32
    s_dim = w1.shape[0]

    # --- layer 1 on the VPU: K = state_dim is tiny, MXU would be ~idle -------
    # TODO(synk): A/B-measure an MXU variant with K padded to 8 (review item).
    h1 = x[:, 0:1] * w1[0:1, :]
    for k in range(1, s_dim):             # static unroll (S is small)
        h1 = h1 + x[:, k:k + 1] * w1[k:k + 1, :]
    h1 = jnp.maximum(h1 + b1_ref[...], 0.0)                        # (TB, 64) f32

    # --- layer 2 on the MXU: bf16 operands, f32 accumulation ------------------
    h2 = jnp.dot(h1.astype(jnp.bfloat16), w2_ref[...],
                 preferred_element_type=jnp.float32) + b2_ref[...]
    h2 = jnp.maximum(h2, 0.0)                                      # (TB, 64) f32

    # --- layer 3 (lane-padded to 128 output columns) on the MXU ---------------
    q = jnp.dot(h2.astype(jnp.bfloat16), w3_ref[...],
                preferred_element_type=jnp.float32) + b3_ref[...]  # (TB, 128) f32

    # --- fused greedy action (evaluate()): first index achieving the max ------
    lane = jax.lax.broadcasted_iota(jnp.int32, (1, LANES), 1)      # (1, 128)
    qmax = jnp.max(q, axis=-1, keepdims=True)                      # (TB, 1)
    act = jnp.min(jnp.where(q == qmax, lane, LANES),
                  axis=-1, keepdims=True)                          # (TB, 1) i32

    # Fold the action into padded lane 127 of the lane-dense q slab so there is
    # a single unmasked, lane-dense output store (no second (TB,1) stream).
    is_act_lane = lane == (LANES - 1)                              # (1, 128) bool
    q_out = jnp.where(is_act_lane, act.astype(jnp.float32), q)
    q_ref[...] = q_out.astype(q_ref.dtype)


@functools.partial(jax.jit, static_argnames=("action_dim", "tb"))
def dqn_forward(x, w1, b1, w2, b2, w3p, b3p, *, action_dim, tb=2048):
    """Returns (q_values (B, action_dim) f32, greedy_action (B,) int32)."""
    B, S = x.shape

    # Tile selection: big tiles to amortize per-step overhead; force >=2 tiles
    # for large batches so a 2-TC chip (v7x) can shard the parallel batch axis.
    b_aligned = _round_up(max(B, 1), _SUBLANE)
    n_tiles = max(1, _ceil_div(b_aligned, tb))
    if n_tiles == 1 and b_aligned >= 2 * _MIN_SPLIT_ROWS:
        n_tiles = 2
    TB = _round_up(_ceil_div(b_aligned, n_tiles), _SUBLANE)
    Bp = TB * n_tiles
    x_pad = jnp.pad(x, ((0, Bp - B), (0, 0))) if Bp != B else x

    flops = 2 * Bp * (S * HIDDEN + HIDDEN * HIDDEN + HIDDEN * LANES)
    bytes_accessed = (x_pad.size * 4
                      + w1.size * 4 + b1.size * 4
                      + w2.size * 2 + b2.size * 4
                      + w3p.size * 2 + b3p.size * 4
                      + Bp * LANES * 2)                 # bf16 q writeback

    q_packed = pl.pallas_call(
        dqn_mlp_kernel,
        out_shape=jax.ShapeDtypeStruct((Bp, LANES), jnp.bfloat16),
        grid=(Bp // TB,),
        in_specs=[
            pl.BlockSpec((TB, S), lambda i: (i, 0)),      # x: tiled over batch
            pl.BlockSpec(w1.shape, lambda i: (0, 0)),     # weights / biases:
            pl.BlockSpec(b1.shape, lambda i: (0, 0)),     # constant block index
            pl.BlockSpec(w2.shape, lambda i: (0, 0)),     # -> VMEM-resident
            pl.BlockSpec(b2.shape, lambda i: (0, 0)),     #    across the grid
            pl.BlockSpec(w3p.shape, lambda i: (0, 0)),
            pl.BlockSpec(b3p.shape, lambda i: (0, 0)),
        ],
        out_specs=pl.BlockSpec((TB, LANES), lambda i: (i, 0)),
        compiler_params=pltpu.CompilerParams(
            dimension_semantics=("parallel",)),           # v7x: 2 TCs share batch
        cost_estimate=pl.CostEstimate(flops=flops, transcendentals=0,
                                      bytes_accessed=bytes_accessed),
    )(x_pad, w1, b1, w2, b2, w3p, b3p)

    q = q_packed[:B, :action_dim].astype(jnp.float32)
    act = q_packed[:B, LANES - 1].astype(jnp.int32)       # exact: 0..127 in bf16
    return q, act


# -----------------------------------------------------------------------------
# Deterministic parameter init mirroring DQNNet.init():
#   orthogonal_(weight, gain=1), uniform_(bias, 0, 1).
# Weights are produced in PyTorch's (out, in) convention, then transposed to
# (in, out) for the kernel's y = x @ W layout. W3/b3 are lane-padded to 128.
# -----------------------------------------------------------------------------
def orthogonal_init(key, out_features, in_features, gain=1.0):
    rows, cols = out_features, in_features
    flat = jax.random.normal(key, (rows, cols), dtype=jnp.float32)
    if rows < cols:
        flat = flat.T
    q, r = jnp.linalg.qr(flat)
    d = jnp.sign(jnp.diagonal(r))
    d = jnp.where(d == 0, 1.0, d)        # guard sign(0) -> keep column nonzero
    q = q * d[None, :]
    if rows < cols:
        q = q.T
    return gain * q                       # (out_features, in_features)


def make_params(key, state_dim, action_dim):
    ks = jax.random.split(key, 6)
    w1_pt = orthogonal_init(ks[0], HIDDEN, state_dim)       # (64, S)
    b1 = jax.random.uniform(ks[1], (1, HIDDEN), dtype=jnp.float32)
    w2_pt = orthogonal_init(ks[2], HIDDEN, HIDDEN)          # (64, 64)
    b2 = jax.random.uniform(ks[3], (1, HIDDEN), dtype=jnp.float32)
    w3_pt = orthogonal_init(ks[4], action_dim, HIDDEN)      # (A, 64)
    b3 = jax.random.uniform(ks[5], (1, action_dim), dtype=jnp.float32)

    w1 = w1_pt.T                                            # (S, 64) f32 (VPU layer)
    w2 = w2_pt.T.astype(jnp.bfloat16)                       # (64, 64) bf16 (MXU)
    w3p = jnp.zeros((HIDDEN, LANES), jnp.float32).at[:, :action_dim].set(w3_pt.T)
    w3p = w3p.astype(jnp.bfloat16)                          # (64, 128) bf16 (MXU)
    b3p = jnp.full((1, LANES), NEG_BIG, jnp.float32).at[:, :action_dim].set(b3)
    return (w1, b1, w2, b2, w3p, b3p)


def reference_forward(x, w1, b1, w2, b2, w3p, b3p, *, action_dim):
    """Pure-JAX reference with the same bf16/f32 mixed precision as the kernel
    (layer 1 at HIGHEST precision so it matches the kernel's f32 VPU FMAs)."""
    h1 = jnp.maximum(
        jnp.dot(x, w1, precision=jax.lax.Precision.HIGHEST) + b1, 0.0)
    h2 = jnp.maximum(
        jnp.dot(h1.astype(jnp.bfloat16), w2, preferred_element_type=jnp.float32)
        + b2, 0.0)
    q = jnp.dot(h2.astype(jnp.bfloat16), w3p,
                preferred_element_type=jnp.float32) + b3p
    return q[:, :action_dim]


if __name__ == "__main__":
    key = jax.random.PRNGKey(0)
    state_dim = 3       # second-order-integrator state
    action_dim = 5      # discretized action set
    batch = 8

    k_params, k_x = jax.random.split(key)
    params = make_params(k_params, state_dim, action_dim)
    x = jax.random.normal(k_x, (batch, state_dim), dtype=jnp.float32)

    q, act = jax.block_until_ready(dqn_forward(x, *params, action_dim=action_dim))
    ref_q = reference_forward(x, *params, action_dim=action_dim)

    assert q.shape == (batch, action_dim) and act.shape == (batch,)
    assert q.dtype == jnp.float32 and act.dtype == jnp.int32
    assert jnp.allclose(q, ref_q, atol=2e-2, rtol=2e-2), "Q mismatch vs reference"
    assert jnp.all((act >= 0) & (act < action_dim)), "action out of range"
    picked = jnp.take_along_axis(ref_q, act[:, None], axis=-1)[:, 0]
    assert jnp.all(picked >= ref_q.max(axis=-1) - 2e-2), "non-greedy action"

    # Exercise the multi-tile grid (>=2 steps) and non-multiple batch padding.
    x_big = jax.random.normal(k_x, (1000, state_dim), dtype=jnp.float32)
    q_big, act_big = jax.block_until_ready(
        dqn_forward(x_big, *params, action_dim=action_dim, tb=512))
    ref_big = reference_forward(x_big, *params, action_dim=action_dim)
    assert q_big.shape == (1000, action_dim) and act_big.shape == (1000,)
    assert jnp.allclose(q_big, ref_big, atol=2e-2, rtol=2e-2), "large-batch mismatch"
    assert jnp.all((act_big >= 0) & (act_big < action_dim))
    picked_b = jnp.take_along_axis(ref_big, act_big[:, None], axis=-1)[:, 0]
    assert jnp.all(picked_b >= ref_big.max(axis=-1) - 2e-2), "non-greedy action (big)"

    print("KERNEL_OK")
</pallas_src>

<mosaic_0001>
module attributes {stable_mosaic.version = 11 : i64} {
  func.func @dqn_mlp_kernel(%arg0: i32, %arg1: memref<16x3xf32, #tpu.memory_space<vmem>>, %arg2: memref<3x64xf32, #tpu.memory_space<vmem>>, %arg3: memref<1x64xf32, #tpu.memory_space<vmem>>, %arg4: memref<64x64xbf16, #tpu.memory_space<vmem>>, %arg5: memref<1x64xf32, #tpu.memory_space<vmem>>, %arg6: memref<64x128xbf16, #tpu.memory_space<vmem>>, %arg7: memref<1x128xf32, #tpu.memory_space<vmem>>, %arg8: memref<16x128xbf16, #tpu.memory_space<vmem>>) attributes {dimension_semantics = [#tpu.dimension_semantics<parallel>], iteration_bounds = array<i64: 1>, scalar_prefetch = 0 : i64, scratch_operands = 0 : i64, tpu.core_type = #tpu.core_type<tc>, window_params = [{transform_indices = @transform_0, window_bounds = array<i64: 16, 3>}, {pipeline_mode = #tpu.pipeline_mode<synchronous>, transform_indices = @transform_1, window_bounds = array<i64: 3, 64>}, {pipeline_mode = #tpu.pipeline_mode<synchronous>, transform_indices = @transform_2, window_bounds = array<i64: 1, 64>}, {pipeline_mode = #tpu.pipeline_mode<synchronous>, transform_indices = @transform_3, window_bounds = array<i64: 64, 64>}, {pipeline_mode = #tpu.pipeline_mode<synchronous>, transform_indices = @transform_4, window_bounds = array<i64: 1, 64>}, {pipeline_mode = #tpu.pipeline_mode<synchronous>, transform_indices = @transform_5, window_bounds = array<i64: 64, 128>}, {pipeline_mode = #tpu.pipeline_mode<synchronous>, transform_indices = @transform_6, window_bounds = array<i64: 1, 128>}, {transform_indices = @transform_7, window_bounds = array<i64: 16, 128>}]} {
    %c0 = arith.constant 0 : index
    %c0_0 = arith.constant 0 : index
    %0 = vector.load %arg1[%c0, %c0_0] : memref<16x3xf32, #tpu.memory_space<vmem>>, vector<16x3xf32>
    %c0_1 = arith.constant 0 : index
    %c0_2 = arith.constant 0 : index
    %1 = vector.load %arg2[%c0_1, %c0_2] : memref<3x64xf32, #tpu.memory_space<vmem>>, vector<3x64xf32>
    %2 = vector.extract_strided_slice %0 {offsets = [0, 0], sizes = [16, 1], strides = [1, 1]} : vector<16x3xf32> to vector<16x1xf32>
    %3 = vector.extract_strided_slice %1 {offsets = [0, 0], sizes = [1, 64], strides = [1, 1]} : vector<3x64xf32> to vector<1x64xf32>
    %4 = vector.broadcast %2 : vector<16x1xf32> to vector<16x64xf32>
    %5 = vector.broadcast %3 : vector<1x64xf32> to vector<16x64xf32>
    %6 = arith.mulf %4, %5 : vector<16x64xf32>
    %7 = vector.extract_strided_slice %0 {offsets = [0, 1], sizes = [16, 1], strides = [1, 1]} : vector<16x3xf32> to vector<16x1xf32>
    %8 = vector.extract_strided_slice %1 {offsets = [1, 0], sizes = [1, 64], strides = [1, 1]} : vector<3x64xf32> to vector<1x64xf32>
    %9 = vector.broadcast %7 : vector<16x1xf32> to vector<16x64xf32>
    %10 = vector.broadcast %8 : vector<1x64xf32> to vector<16x64xf32>
    %11 = arith.mulf %9, %10 : vector<16x64xf32>
    %12 = arith.addf %6, %11 : vector<16x64xf32>
    %13 = vector.extract_strided_slice %0 {offsets = [0, 2], sizes = [16, 1], strides = [1, 1]} : vector<16x3xf32> to vector<16x1xf32>
    %14 = vector.extract_strided_slice %1 {offsets = [2, 0], sizes = [1, 64], strides = [1, 1]} : vector<3x64xf32> to vector<1x64xf32>
    %15 = vector.broadcast %13 : vector<16x1xf32> to vector<16x64xf32>
    %16 = vector.broadcast %14 : vector<1x64xf32> to vector<16x64xf32>
    %17 = arith.mulf %15, %16 : vector<16x64xf32>
    %18 = arith.addf %12, %17 : vector<16x64xf32>
    %c0_3 = arith.constant 0 : index
    %c0_4 = arith.constant 0 : index
    %19 = vector.load %arg3[%c0_3, %c0_4] : memref<1x64xf32, #tpu.memory_space<vmem>>, vector<1x64xf32>
    %20 = vector.broadcast %19 : vector<1x64xf32> to vector<16x64xf32>
    %21 = arith.addf %18, %20 : vector<16x64xf32>
    %cst = arith.constant 0.000000e+00 : f32
    %22 = vector.broadcast %cst : f32 to vector<16x64xf32>
    %23 = arith.maximumf %21, %22 : vector<16x64xf32>
    %24 = arith.truncf %23 : vector<16x64xf32> to vector<16x64xbf16>
    %c0_5 = arith.constant 0 : index
    %c0_6 = arith.constant 0 : index
    %25 = vector.load %arg4[%c0_5, %c0_6] : memref<64x64xbf16, #tpu.memory_space<vmem>>, vector<64x64xbf16>
    %cst_7 = arith.constant dense<0.000000e+00> : vector<16x64xf32>
    %26 = tpu.matmul %24, %25, %cst_7 {dimension_numbers = #tpu.dot_dimension_numbers<[1], [0], [0], [1], [0, 0, 1, 1], [], []>} : vector<16x64xbf16>, vector<64x64xbf16>, vector<16x64xf32> -> vector<16x64xf32>
    %c0_8 = arith.constant 0 : index
    %c0_9 = arith.constant 0 : index
    %27 = vector.load %arg5[%c0_8, %c0_9] : memref<1x64xf32, #tpu.memory_space<vmem>>, vector<1x64xf32>
    %28 = vector.broadcast %27 : vector<1x64xf32> to vector<16x64xf32>
    %29 = arith.addf %26, %28 : vector<16x64xf32>
    %cst_10 = arith.constant 0.000000e+00 : f32
    %30 = vector.broadcast %cst_10 : f32 to vector<16x64xf32>
    %31 = arith.maximumf %29, %30 : vector<16x64xf32>
    %32 = arith.truncf %31 : vector<16x64xf32> to vector<16x64xbf16>
    %c0_11 = arith.constant 0 : index
    %c0_12 = arith.constant 0 : index
    %33 = vector.load %arg6[%c0_11, %c0_12] : memref<64x128xbf16, #tpu.memory_space<vmem>>, vector<64x128xbf16>
    %cst_13 = arith.constant dense<0.000000e+00> : vector<16x128xf32>
    %34 = tpu.matmul %32, %33, %cst_13 {dimension_numbers = #tpu.dot_dimension_numbers<[1], [0], [0], [1], [0, 0, 1, 1], [], []>} : vector<16x64xbf16>, vector<64x128xbf16>, vector<16x128xf32> -> vector<16x128xf32>
    %c0_14 = arith.constant 0 : index
    %c0_15 = arith.constant 0 : index
    %35 = vector.load %arg7[%c0_14, %c0_15] : memref<1x128xf32, #tpu.memory_space<vmem>>, vector<1x128xf32>
    %36 = vector.broadcast %35 : vector<1x128xf32> to vector<16x128xf32>
    %37 = arith.addf %34, %36 : vector<16x128xf32>
    %38 = tpu.iota {dimensions = array<i32: 1>} : vector<1x128xi32>
    %cst_16 = arith.constant dense<0xFF800000> : vector<16xf32>
    %39 = vector.multi_reduction <maximumf>, %37, %cst_16 [1] : vector<16x128xf32> to vector<16xf32>
    %40 = vector.shape_cast %39 : vector<16xf32> to vector<16x1xf32>
    %41 = vector.broadcast %40 : vector<16x1xf32> to vector<16x128xf32>
    %42 = arith.cmpf oeq, %37, %41 : vector<16x128xf32>
    %c128_i32 = arith.constant 128 : i32
    %43 = vector.shape_cast %38 : vector<1x128xi32> to vector<1x128xi32>
    %44 = vector.broadcast %43 : vector<1x128xi32> to vector<16x128xi32>
    %45 = vector.broadcast %c128_i32 : i32 to vector<16x128xi32>
    %46 = arith.select %42, %44, %45 : vector<16x128xi1>, vector<16x128xi32>
    %cst_17 = arith.constant dense<2147483647> : vector<16xi32>
    %47 = vector.multi_reduction <minsi>, %46, %cst_17 [1] : vector<16x128xi32> to vector<16xi32>
    %48 = vector.shape_cast %47 : vector<16xi32> to vector<16x1xi32>
    %c127_i32 = arith.constant 127 : i32
    %49 = vector.broadcast %c127_i32 : i32 to vector<1x128xi32>
    %50 = arith.cmpi eq, %38, %49 : vector<1x128xi32>
    %51 = arith.sitofp %48 : vector<16x1xi32> to vector<16x1xf32>
    %52 = vector.shape_cast %50 : vector<1x128xi1> to vector<1x128xi1>
    %53 = vector.broadcast %52 : vector<1x128xi1> to vector<16x128xi1>
    %54 = vector.shape_cast %51 : vector<16x1xf32> to vector<16x1xf32>
    %55 = vector.broadcast %54 : vector<16x1xf32> to vector<16x128xf32>
    %56 = arith.select %53, %55, %37 : vector<16x128xi1>, vector<16x128xf32>
    %57 = arith.truncf %56 : vector<16x128xf32> to vector<16x128xbf16>
    %c0_18 = arith.constant 0 : index
    %c0_19 = arith.constant 0 : index
    %58 = vector.load %arg8[%c0_18, %c0_19] : memref<16x128xbf16, #tpu.memory_space<vmem>>, vector<16x128xbf16>
    tpu.vector_store %arg8[%c0_18, %c0_19], %57 {strides = array<i32>} : memref<16x128xbf16, #tpu.memory_space<vmem>>, vector<16x128xbf16>,
    return
  }
  func.func @transform_0(%arg0: i32) -> (i32, i32) {
    %c0_i32 = arith.constant 0 : i32
    %c0_i32_0 = arith.constant 0 : i32
    return %arg0, %c0_i32 : i32, i32
  }
  func.func @transform_1(%arg0: i32) -> (i32, i32) {
    %c0_i32 = arith.constant 0 : i32
    %c0_i32_0 = arith.constant 0 : i32
    %c0_i32_1 = arith.constant 0 : i32
    return %c0_i32, %c0_i32_0 : i32, i32
  }
  func.func @transform_2(%arg0: i32) -> (i32, i32) {
    %c0_i32 = arith.constant 0 : i32
    %c0_i32_0 = arith.constant 0 : i32
    %c0_i32_1 = arith.constant 0 : i32
    return %c0_i32, %c0_i32_0 : i32, i32
  }
  func.func @transform_3(%arg0: i32) -> (i32, i32) {
    %c0_i32 = arith.constant 0 : i32
    %c0_i32_0 = arith.constant 0 : i32
    %c0_i32_1 = arith.constant 0 : i32
    return %c0_i32, %c0_i32_0 : i32, i32
  }
  func.func @transform_4(%arg0: i32) -> (i32, i32) {
    %c0_i32 = arith.constant 0 : i32
    %c0_i32_0 = arith.constant 0 : i32
    %c0_i32_1 = arith.constant 0 : i32
    return %c0_i32, %c0_i32_0 : i32, i32
  }
  func.func @transform_5(%arg0: i32) -> (i32, i32) {
    %c0_i32 = arith.constant 0 : i32
    %c0_i32_0 = arith.constant 0 : i32
    %c0_i32_1 = arith.constant 0 : i32
    return %c0_i32, %c0_i32_0 : i32, i32
  }
  func.func @transform_6(%arg0: i32) -> (i32, i32) {
    %c0_i32 = arith.constant 0 : i32
    %c0_i32_0 = arith.constant 0 : i32
    %c0_i32_1 = arith.constant 0 : i32
    return %c0_i32, %c0_i32_0 : i32, i32
  }
  func.func @transform_7(%arg0: i32) -> (i32, i32) {
    %c0_i32 = arith.constant 0 : i32
    %c0_i32_0 = arith.constant 0 : i32
    return %arg0, %c0_i32 : i32, i32
  }
}

</mosaic_0001>

<bundles_post_ra>
// kernel: dqn_forward.1
= control target key start
LH: loop header
LB: loop body
LE: loop exit
PB: predicated region body
PF: predicated region fallthrough
CT: control target
= control target key end

     0   :  { %12 = vsyncpa [#allocation3], 0  ;;  %s344_s27 = smov [#allocation2]   ;;  %s345_s29 = smov 64   ;;  %s428_s0 = inlined_call_operand.vmem [shape: f32[16,3], index: 0, kind: input, shape index: {}]   ;;  %s429_s1 = inlined_call_operand.vmem [shape: f32[3,64], index: 1, kind: input, shape index: {}]   ;;  %s430_s2 = inlined_call_operand.vmem [shape: f32[1,64], index: 2, kind: input, shape index: {}]   ;;  %s431_s3 = inlined_call_operand.vmem [shape: bf16[64,64], index: 3, kind: input, shape index: {}]   ;;  %s432_s4 = inlined_call_operand.vmem [shape: f32[1,64], index: 4, kind: input, shape index: {}]   ;;  %s433_s5 = inlined_call_operand.hbm [shape: bf16[64,128], index: 5, kind: input, shape index: {}]   ;;  %s434_s6 = inlined_call_operand.vmem [shape: f32[1,128], index: 6, kind: input, shape index: {}]   ;;  %s435_s7 = inlined_call_operand.vmem [shape: bf16[16,128], index: 7, kind: output, shape index: {}]  }
   0x1   :  { %s27_s26 = sshll.u32 %s433_s5, 4  ;;  %s29_s28 = sshll.u32 %s344_s27, 4  ;;  %s28_s26 = int_to_ptr.hbm [resolvable:$true] %s27_s26  ;;  %s30_s28 = int_to_ptr.vmem [resolvable:$true] %s29_s28 }
   0x2   :  { %s346_s30 = smov 4  }
   0x3   :  { %35 = dma.hbm_to_vmem [thread:$0]  %s28_s26, 512, %s30_s28, [#allocation3], %s345_s29, %s345_s29, %s346_s30  }
   0x4   :  { %342 = dma.done.wait [#allocation3], 512  }
   0x5   :  { %343 = vsyncadd [#allocation3], 4294966784  ;;  %v347_v0 = vmov 1   ;;  %v348_v1 = vmov 0   ;;  %v349_v2 = vmov 2   ;;  %v43_v3 = vld [vmem:[%s428_s0] sm:$0xff]  ;;  %v204_v52 = vlaneseq }
   0x6   :  { %312 = vset.pattern.permute.xlu1 %v347_v0  ;;  %311 = vset.pattern.permute.xlu0 %v348_v1  ;;  %v44_v4 = vld [vmem:[%s428_s0 + $0x8] sm:$0xff]  ;;  %v295_v5 = vld [vmem:[%s431_s3 + $0x18] sm:$0xff]  ;;  %v294_v6 = vld [vmem:[%s431_s3 + $0x10] sm:$0xff]  ;;  %vm130_vm0 = vcmask 523264  }
   0x7   :  { %313 = vset.pattern.permute.xlu2 %v349_v2  ;;  %60 = vperm.xlu1 %312, %v43_v3   ;;  %v293_v7 = vld [vmem:[%s431_s3 + $0x8] sm:$0xff]  ;;  %v292_v8 = vld [vmem:[%s431_s3] sm:$0xff]  ;;  %v299_v35 = vld [vmem:[#allocation2 + $0x18] sm:$0xff]  ;;  %v205_v53 = vand.u32 127, %v204_v52 }
   0x8   :  { %48 = vperm.xlu0 %311, %v43_v3   ;;  %73 = vperm.xlu2 %313, %v43_v3   ;;  %v45_v9 = vld [vmem:[%s429_s1] sm:$0x7]  ;;  %v298_v36 = vld [vmem:[#allocation2 + $0x10] sm:$0xff]  ;;  %v297_v37 = vld [vmem:[#allocation2 + $0x8] sm:$0xff] }
   0x9   :  { %138 = vmatpush.bf16.msra.mxu0 %v295_v5  ;;  %v67_v11 = vperm.slane %v45_v9, 1  ;;  %v56_v12 = vperm.slane %v45_v9, 0  ;;  %v80_v15 = vperm.slane %v45_v9, 2  ;;  %v315_v26 = vld [vmem:[%s430_s2] ss:$0 sm:$0xff]  ;;  %194 = vmatpush.bf16.msra.mxu1 %v299_v35  ;;  %vm242_vm5 = vcmp.eq.s32.totalorder %v205_v53, 127 }
   0xa   :  { %v296_v38 = vld [vmem:[#allocation2] sm:$0xff] }
   0xb   :  { %v316_v40 = vld [vmem:[%s432_s4] ss:$0 sm:$0xff] }
   0xc   :  { %v317_v47 = vld [vmem:[%s434_s6] ss:$0 sm:$0xff] }
   0xd   :  { %139 = vmatpush.bf16.msra.mxu0 %v294_v6  ;;  %195 = vmatpush.bf16.msra.mxu1 %v298_v36 }
   0xf   :  { %64 = vperm.xlu1 %312, %v44_v4  }
  0x10   :  { %53 = vperm.xlu0 %311, %v44_v4   ;;  %77 = vperm.xlu2 %313, %v44_v4  }
  0x11   :  { %140 = vmatpush.bf16.msra.mxu0 %v293_v7  ;;  %196 = vmatpush.bf16.msra.mxu1 %v297_v37 }
  0x15   :  { %141 = vmatpush.bf16.msra.mxu0 %v292_v8  ;;  %197 = vmatpush.bf16.msra.mxu1 %v296_v38 }
  0x18   :  { %314 = vset.pattern.permute.xlu0 %v349_v2 }
  0x62   :  { %v74_v10 = vpop.permute.xlu2 %73 }
  0x63   :  { %v81_v18 = vmul.f32 %v80_v15, %v74_v10 }
  0x6a   :  { %v78_v20 = vpop.permute.xlu2 %77 }
  0x6b   :  { %v82_v27 = vmul.f32 %v80_v15, %v78_v20 }
  0x79   :  { %v61_v13 = vpop.permute.xlu1 %60 }
  0x7a   :  { %v49_v14 = vpop.permute.xlu0 %48  ;;  %v68_v16 = vmul.f32 %v67_v11, %v61_v13 }
  0x7b   :  { %v57_v17 = vmul.f32 %v56_v12, %v49_v14 }
  0x7d   :  { %v70_v19 = vadd.f32 %v68_v16, %v57_v17 }
  0x7f   :  { %v83_v23 = vadd.f32 %v81_v18, %v70_v19 }
  0x81   :  { %v65_v21 = vpop.permute.xlu1 %64  ;;  %v89_v30 = vadd.f32 %v315_v26, %v83_v23 }
  0x82   :  { %v54_v22 = vpop.permute.xlu0 %53  ;;  %v69_v24 = vmul.f32 %v67_v11, %v65_v21 }
  0x83   :  { %v58_v25 = vmul.f32 %v56_v12, %v54_v22  ;;  %v91_v32 = vmax.f32 %v89_v30, 0.0 }
  0x85   :  { %v71_v28 = vadd.f32 %v69_v24, %v58_v25 }
  0x87   :  { %v84_v29 = vadd.f32 %v82_v27, %v71_v28 }
  0x89   :  { %v90_v31 = vadd.f32 %v315_v26, %v84_v29 }
  0x8b   :  { %v92_v33 = vmax.f32 %v90_v31, 0.0 }
  0x8d   :  { %v93_v34 = vpack.c.bf16 %v92_v33, %v91_v32 }
  0x8f   :  { %274 = vmatmul.msk.bf16.vlgmr.msra.gmra.mxu0 %vm130_vm0, %v93_v34 }
 0x10c   :  { %v143_v39 = vpop.f32.mrf.mxu0 }
 0x10d   :  { %v144_v41 = vadd.f32 %v316_v40, %v143_v39 }
 0x10f   :  { %v148_v44 = vmax.f32 %v144_v41, 0.0 }
 0x114   :  { %v145_v42 = vpop.f32.mrf.mxu0 }
 0x115   :  { %v146_v43 = vadd.f32 %v316_v40, %v145_v42 }
 0x117   :  { %v149_v45 = vmax.f32 %v146_v43, 0.0 }
 0x119   :  { %v150_v46 = vpack.c.bf16 %v149_v45, %v148_v44 }
 0x11b   :  { %291 = vmatmul.msk.bf16.vlgmr.msra.gmra.mxu1 %vm130_vm0, %v150_v46 }
 0x198   :  { %v199_v48 = vpop.f32.mrf.mxu1 }
 0x199   :  { %v200_v49 = vadd.f32 %v317_v47, %v199_v48 }
 0x19b   :  { %206 = vmax.xlane.f32.xlu0 %v200_v49 }
 0x1a0   :  { %v201_v50 = vpop.f32.mrf.mxu1 }
 0x1a1   :  { %v202_v51 = vadd.f32 %v317_v47, %v201_v50 }
 0x1a3   :  { %208 = vmax.xlane.f32.xlu1 %v202_v51 }
 0x20e   :  { %v207_v54 = vpop.xlane.xlu0 %206 }
 0x20f   :  { %vm210_vm1 = vcmp.eq.f32.partialorder %v200_v49, %v207_v54 }
 0x210   :  { %v212_v55 = vsel %vm210_vm1, %v205_v53, 128 }
 0x211   :  { %v215_v56 = vshra.s32 %v212_v55, 16  ;;  %v214_v62 = vand.u32 65535, %v212_v55 }
 0x213   :  { %v217_v57 = vcvt.s32.f32 %v215_v56  ;;  %v216_v0 = vcvt.s32.f32 %v214_v62 }
 0x215   :  { %218 = vmin.xlane.f32.xlu2 %v217_v57 }
 0x216   :  { %v209_v58 = vpop.xlane.xlu1 %208 }
 0x217   :  { %vm211_vm2 = vcmp.eq.f32.partialorder %v202_v51, %v209_v58 }
 0x218   :  { %v213_v59 = vsel %vm211_vm2, %v205_v53, 128 }
 0x219   :  { %v229_v60 = vshra.s32 %v213_v59, 16  ;;  %v228_v2 = vand.u32 65535, %v213_v59 }
 0x21b   :  { %v231_v61 = vcvt.s32.f32 %v229_v60  ;;  %v230_v4 = vcvt.s32.f32 %v228_v2 }
 0x21d   :  { %232 = vmin.xlane.f32.xlu2 %v231_v61 }
 0x288   :  { %v219_v63 = vpop.xlane.xlu2 %218 }
 0x289   :  { %vm220_vm3 = vcmp.eq.f32.partialorder %v217_v57, %v219_v63  ;;  %v225_v7 = vcvt.f32.s32 %v219_v63 }
 0x28a   :  { %v221_v1 = vsel %vm220_vm3, %v216_v0, inf }
 0x28b   :  { %222 = vmin.xlane.f32.xlu0 %v221_v1  ;;  %v226_v9 = vshll.u32 %v225_v7, 16 }
 0x290   :  { %v233_v3 = vpop.xlane.xlu2 %232 }
 0x291   :  { %vm234_vm4 = vcmp.eq.f32.partialorder %v231_v61, %v233_v3  ;;  %v239_v10 = vcvt.f32.s32 %v233_v3 }
 0x292   :  { %v235_v5 = vsel %vm234_vm4, %v230_v4, inf }
 0x293   :  { %236 = vmin.xlane.f32.xlu1 %v235_v5  ;;  %v240_v13 = vshll.u32 %v239_v10, 16 }
 0x2fe   :  { %v223_v6 = vpop.xlane.xlu0 %222 }
 0x2ff   :  { %v224_v8 = vcvt.f32.s32 %v223_v6 }
 0x301   :  { %v227_v11 = vadd.s32 %v226_v9, %v224_v8 }
 0x303   :  { %v243_v15 = vcvt.s32.f32 %v227_v11 }
 0x305   :  { %v247_v18 = vsel %vm242_vm5, %v243_v15, %v200_v49 }
 0x306   :  { %v237_v12 = vpop.xlane.xlu1 %236 }
 0x307   :  { %v238_v14 = vcvt.f32.s32 %v237_v12 }
 0x309   :  { %v241_v16 = vadd.s32 %v240_v13, %v238_v14 }
 0x30b   :  { %v244_v17 = vcvt.s32.f32 %v241_v16 }
 0x30d   :  { %v248_v19 = vsel %vm242_vm5, %v244_v17, %v202_v51 }
 0x30e   :  { %v303_v20 = vpack.c.bf16 %v248_v19, %v247_v18 }
 0x310   :  { %304 = vst [vmem:[%s435_s7] sm:$0xff] %v303_v20  }
 0x311   :  { %257 = vsyncpa [#allocation3], 1 }

</bundles_post_ra>
